<compile_context>
chip_gen: v6e
topology: v6e:2x2x1
jax: 0.10.0
libtpu: 0.0.40
codegen_flags: <defaults>
</compile_context>

<pallas_src>
import functools

import jax
import jax.numpy as jnp
from jax import lax
from jax.experimental import pallas as pl
from jax.experimental.pallas import tpu as pltpu


# ----------------------------------------------------------------------------
# Pallas kernel: one program = `tb` images x ONE output row x one Cout tile.
# ----------------------------------------------------------------------------
def _conv_adapt_row_kernel(x0_ref, x1_ref, x2_ref, w_ref, o_ref, *, wo, stride, cin):
    """
    x{0,1,2}_ref : (tb, Wp, Cin)  padded input rows  oh*stride + {0,1,2}  (bf16)
    w_ref        : (9*Cin, tn)    folded (3x3 + centre-tap 1x1) weights   (bf16)
    o_ref        : (tb, Wo, tn)   output row tile
    """
    tb = o_ref.shape[0]
    tn = o_ref.shape[-1]
    w = w_ref[...]                                   # weight tile, resident

    # Build the (tb, Wo, 9*Cin) patch matrix from the three resident rows.
    # Only static array slices (no ref indexers) -> robust lowering everywhere.
    taps = []
    for x_ref in (x0_ref, x1_ref, x2_ref):           # row tap di = 0, 1, 2
        x = x_ref[...]                                # (tb, Wp, Cin)
        for dj in range(3):                           # column tap dj = 0, 1, 2
            limit = dj + (wo - 1) * stride + 1
            taps.append(x[:, dj:limit:stride, :])     # (tb, Wo, Cin)
    lhs = jnp.concatenate(taps, axis=-1)              # (tb, Wo, 9*Cin), VMEM only

    # ONE MXU matmul for the whole block: M = tb*Wo, f32 accumulation,
    # one dense lane-wide store.
    lhs = lhs.reshape(tb * wo, 9 * cin)
    acc = jnp.dot(lhs, w, preferred_element_type=jnp.float32)   # (tb*Wo, tn) f32
    o_ref[...] = acc.reshape(tb, wo, tn).astype(o_ref.dtype)


# ----------------------------------------------------------------------------
# Parameter-prep-time fold (exact):
#   conv3x3(x, w3, pad=1) + conv1x1(x, w1, pad=0)  ==  conv3x3(x, w3', pad=1)
# with w3'[:, :, 1, 1] = w3[:, :, 1, 1] + w1[:, :, 0, 0].
# Cout is zero-padded to a multiple of 128 for lane-dense stores / full MXU N.
# ----------------------------------------------------------------------------
def fold_conv_adapt_weights(w3, w1, compute_dtype=jnp.bfloat16):
    cout, cin = w3.shape[0], w3.shape[1]
    w3f = w3.astype(jnp.float32).at[:, :, 1, 1].add(w1[:, :, 0, 0].astype(jnp.float32))
    # (Cout, Cin, 3, 3) -> (3, 3, Cin, Cout) -> (9*Cin, Cout); row = (di*3+dj)*Cin + c
    w_mat = jnp.transpose(w3f, (2, 3, 1, 0)).reshape(9 * cin, cout)
    cout_p = ((cout + 127) // 128) * 128
    if cout_p != cout:
        w_mat = jnp.pad(w_mat, ((0, 0), (0, cout_p - cout)))
    return w_mat.astype(compute_dtype)


# ----------------------------------------------------------------------------
# Tile selection with an explicit per-step VMEM budget (incl. output tile).
# ----------------------------------------------------------------------------
def _vmem_capacity_bytes():
    try:
        return int(pltpu.get_tpu_info().vmem_capacity_bytes)
    except Exception:
        return 64 * 1024 * 1024        # conservative (v7x per-core VMEM)


def _choose_tiles(n, cout_p, k9, cin, wp, wo, x_bytes, w_bytes, out_bytes, budget):
    tb_cands = [d for d in (8, 4, 2, 1) if n % d == 0]
    tn_cands = [t for t in range(cout_p, 127, -128) if cout_p % t == 0]  # 128-multiples
    for tb in tb_cands:                # prioritise batch tile (MXU M fill)
        for tn in tn_cands:            # then the largest lane-dense Cout tile
            vmem = (2 * k9 * tn * w_bytes            # double-buffered weight tile
                    + 6 * tb * wp * cin * x_bytes    # 3 row refs x 2 buffers
                    + 2 * tb * wo * tn * out_bytes)  # double-buffered OUTPUT tile
            if vmem <= budget:
                return tb, tn, vmem
    tb, tn = 1, tn_cands[-1]
    vmem = 2 * k9 * tn * w_bytes + 6 * wp * cin * x_bytes + 2 * wo * tn * out_bytes
    return tb, tn, vmem


# ----------------------------------------------------------------------------
# Forward pass (NCHW in / NCHW out, like the PyTorch module).
# ----------------------------------------------------------------------------
@functools.partial(jax.jit, static_argnames=("cout", "stride", "out_dtype"))
def conv_adapt_forward(x_nchw, w_mat, *, cout, stride=1, out_dtype=jnp.float32):
    n, cin, h, w = x_nchw.shape
    k9, cout_p = w_mat.shape
    assert k9 == 9 * cin, (k9, cin)
    assert cout_p % 128 == 0 and cout <= cout_p, (cout, cout_p)
    s = stride
    ho = (h - 1) // s + 1
    wo = (w - 1) // s + 1
    wp = w + 2

    # NCHW -> NHWC (channels on lanes), MXU operand dtype, 1-px conv border pad.
    x = jnp.transpose(x_nchw, (0, 2, 3, 1)).astype(w_mat.dtype)
    xp = jnp.pad(x, ((0, 0), (1, 1), (1, 1), (0, 0)))

    x_bytes = jnp.dtype(w_mat.dtype).itemsize
    out_bytes = jnp.dtype(out_dtype).itemsize
    vmem_cap = _vmem_capacity_bytes()
    tb, tn, tile_vmem = _choose_tiles(
        n, cout_p, k9, cin, wp, wo, x_bytes, x_bytes, out_bytes, vmem_cap // 4)
    vmem_limit = min(vmem_cap * 3 // 4, max(2 * tile_vmem + (8 << 20), 32 << 20))

    # Cout tile slowest (weight tile stays resident / minimal weight DMA),
    # output row fastest.  Every output tile is independent -> all "parallel"
    # so v7x can shard the grid across its two TensorCores.
    grid = (cout_p // tn, n // tb, ho)

    def x_spec(di):
        return pl.BlockSpec(
            (tb, None, wp, cin),
            lambda jc, nb, oh: (nb, oh * s + di, 0, 0))   # size-1 row block => element idx

    w_spec = pl.BlockSpec((k9, tn), lambda jc, nb, oh: (0, jc))
    o_spec = pl.BlockSpec((tb, None, wo, tn), lambda jc, nb, oh: (nb, oh, 0, jc))

    kernel = functools.partial(_conv_adapt_row_kernel, wo=wo, stride=s, cin=cin)

    y = pl.pallas_call(
        kernel,
        out_shape=jax.ShapeDtypeStruct((n, ho, wo, cout_p), out_dtype),
        grid=grid,
        in_specs=[x_spec(0), x_spec(1), x_spec(2), w_spec],
        out_specs=o_spec,
        compiler_params=pltpu.CompilerParams(
            dimension_semantics=("parallel", "parallel", "parallel"),
            vmem_limit_bytes=int(vmem_limit)),
    )(xp, xp, xp, w_mat)

    # Drop the Cout padding and return NCHW (slice + transpose fuse in XLA).
    return jnp.transpose(y[..., :cout], (0, 3, 1, 2))


def conv_adapt_apply(x_nchw, w3, w1, stride=1, compute_dtype=jnp.bfloat16):
    """Convenience wrapper matching the PyTorch module signature."""
    w_mat = fold_conv_adapt_weights(w3, w1, compute_dtype)
    return conv_adapt_forward(x_nchw, w_mat, cout=w3.shape[0], stride=stride)


# ----------------------------------------------------------------------------
# Pure-JAX reference (exact PyTorch semantics: two separate convs, summed).
# ----------------------------------------------------------------------------
def conv_adapt_reference(x_nchw, w3, w1, stride=1):
    dn = ("NCHW", "OIHW", "NCHW")
    y3 = lax.conv_general_dilated(x_nchw, w3, (stride, stride),
                                  ((1, 1), (1, 1)), dimension_numbers=dn)
    y1 = lax.conv_general_dilated(x_nchw, w1, (stride, stride),
                                  ((0, 0), (0, 0)), dimension_numbers=dn)
    return y3 + y1


# ----------------------------------------------------------------------------
if __name__ == "__main__":
    key = jax.random.PRNGKey(0)
    kx, k3, k1 = jax.random.split(key, 3)

    n, cin, h, w, cout = 2, 4, 16, 16, 8
    x = jax.random.normal(kx, (n, cin, h, w), jnp.float32)
    w3 = 0.05 * jax.random.normal(k3, (cout, cin, 3, 3), jnp.float32)
    # PyTorch initialises the 1x1 weight to zero; use non-zero values here so
    # the folded 1x1 branch is actually exercised (forward must hold post-training).
    w1 = 0.05 * jax.random.normal(k1, (cout, cin, 1, 1), jnp.float32)

    w_mat = fold_conv_adapt_weights(w3, w1)              # parameter-prep-time fold

    for stride in (1, 2):
        y = conv_adapt_forward(x, w_mat, cout=cout, stride=stride)
        y = jax.block_until_ready(y)
        ref = conv_adapt_reference(x, w3, w1, stride)
        assert y.shape == ref.shape, (y.shape, ref.shape)
        assert bool(jnp.all(jnp.isfinite(y)))
        err = float(jnp.max(jnp.abs(y - ref)))
        assert err < 3e-2, f"stride={stride}: max abs err {err}"

    print("KERNEL_OK")
</pallas_src>

<mosaic_0001>
module attributes {stable_mosaic.version = 11 : i64} {
  func.func @_conv_adapt_row_kernel(%arg0: i32, %arg1: i32, %arg2: i32, %arg3: memref<2x1x18x4xbf16, #tpu.memory_space<vmem>>, %arg4: memref<2x1x18x4xbf16, #tpu.memory_space<vmem>>, %arg5: memref<2x1x18x4xbf16, #tpu.memory_space<vmem>>, %arg6: memref<36x128xbf16, #tpu.memory_space<vmem>>, %arg7: memref<2x1x16x128xf32, #tpu.memory_space<vmem>>) attributes {dimension_semantics = [#tpu.dimension_semantics<parallel>, #tpu.dimension_semantics<parallel>, #tpu.dimension_semantics<parallel>], iteration_bounds = array<i64: 1, 1, 16>, scalar_prefetch = 0 : i64, scratch_operands = 0 : i64, tpu.core_type = #tpu.core_type<tc>, window_params = [{transform_indices = @transform_0, window_bounds = array<i64: 2, 1, 18, 4>}, {transform_indices = @transform_1, window_bounds = array<i64: 2, 1, 18, 4>}, {transform_indices = @transform_2, window_bounds = array<i64: 2, 1, 18, 4>}, {transform_indices = @transform_3, window_bounds = array<i64: 36, 128>}, {transform_indices = @transform_4, window_bounds = array<i64: 2, 1, 16, 128>}]} {
    %c0 = arith.constant 0 : index
    %c0_0 = arith.constant 0 : index
    %0 = vector.load %arg6[%c0, %c0_0] : memref<36x128xbf16, #tpu.memory_space<vmem>>, vector<36x128xbf16>
    %c0_1 = arith.constant 0 : index
    %c0_2 = arith.constant 0 : index
    %c0_3 = arith.constant 0 : index
    %c0_4 = arith.constant 0 : index
    %1 = vector.load %arg3[%c0_1, %c0_2, %c0_3, %c0_4] : memref<2x1x18x4xbf16, #tpu.memory_space<vmem>>, vector<2x1x18x4xbf16>
    %2 = vector.shape_cast %1 : vector<2x1x18x4xbf16> to vector<2x18x4xbf16>
    %3 = vector.extract_strided_slice %2 {offsets = [0, 0, 0], sizes = [2, 16, 4], strides = [1, 1, 1]} : vector<2x18x4xbf16> to vector<2x16x4xbf16>
    %4 = vector.extract_strided_slice %2 {offsets = [0, 1, 0], sizes = [2, 16, 4], strides = [1, 1, 1]} : vector<2x18x4xbf16> to vector<2x16x4xbf16>
    %5 = vector.extract_strided_slice %2 {offsets = [0, 2, 0], sizes = [2, 16, 4], strides = [1, 1, 1]} : vector<2x18x4xbf16> to vector<2x16x4xbf16>
    %c0_5 = arith.constant 0 : index
    %c0_6 = arith.constant 0 : index
    %c0_7 = arith.constant 0 : index
    %c0_8 = arith.constant 0 : index
    %6 = vector.load %arg4[%c0_5, %c0_6, %c0_7, %c0_8] : memref<2x1x18x4xbf16, #tpu.memory_space<vmem>>, vector<2x1x18x4xbf16>
    %7 = vector.shape_cast %6 : vector<2x1x18x4xbf16> to vector<2x18x4xbf16>
    %8 = vector.extract_strided_slice %7 {offsets = [0, 0, 0], sizes = [2, 16, 4], strides = [1, 1, 1]} : vector<2x18x4xbf16> to vector<2x16x4xbf16>
    %9 = vector.extract_strided_slice %7 {offsets = [0, 1, 0], sizes = [2, 16, 4], strides = [1, 1, 1]} : vector<2x18x4xbf16> to vector<2x16x4xbf16>
    %10 = vector.extract_strided_slice %7 {offsets = [0, 2, 0], sizes = [2, 16, 4], strides = [1, 1, 1]} : vector<2x18x4xbf16> to vector<2x16x4xbf16>
    %c0_9 = arith.constant 0 : index
    %c0_10 = arith.constant 0 : index
    %c0_11 = arith.constant 0 : index
    %c0_12 = arith.constant 0 : index
    %11 = vector.load %arg5[%c0_9, %c0_10, %c0_11, %c0_12] : memref<2x1x18x4xbf16, #tpu.memory_space<vmem>>, vector<2x1x18x4xbf16>
    %12 = vector.shape_cast %11 : vector<2x1x18x4xbf16> to vector<2x18x4xbf16>
    %13 = vector.extract_strided_slice %12 {offsets = [0, 0, 0], sizes = [2, 16, 4], strides = [1, 1, 1]} : vector<2x18x4xbf16> to vector<2x16x4xbf16>
    %14 = vector.extract_strided_slice %12 {offsets = [0, 1, 0], sizes = [2, 16, 4], strides = [1, 1, 1]} : vector<2x18x4xbf16> to vector<2x16x4xbf16>
    %15 = vector.extract_strided_slice %12 {offsets = [0, 2, 0], sizes = [2, 16, 4], strides = [1, 1, 1]} : vector<2x18x4xbf16> to vector<2x16x4xbf16>
    %16 = tpu.concatenate %3, %4, %5, %8, %9, %10, %13, %14, %15 in 2 : vector<2x16x4xbf16>, vector<2x16x4xbf16>, vector<2x16x4xbf16>, vector<2x16x4xbf16>, vector<2x16x4xbf16>, vector<2x16x4xbf16>, vector<2x16x4xbf16>, vector<2x16x4xbf16>, vector<2x16x4xbf16> -> vector<2x16x36xbf16>
    %17 = vector.shape_cast %16 : vector<2x16x36xbf16> to vector<32x36xbf16>
    %cst = arith.constant dense<0.000000e+00> : vector<32x128xf32>
    %18 = tpu.matmul %17, %0, %cst {dimension_numbers = #tpu.dot_dimension_numbers<[1], [0], [0], [1], [0, 0, 1, 1], [], []>} : vector<32x36xbf16>, vector<36x128xbf16>, vector<32x128xf32> -> vector<32x128xf32>
    %19 = vector.shape_cast %18 : vector<32x128xf32> to vector<2x16x128xf32>
    %c0_13 = arith.constant 0 : index
    %c0_14 = arith.constant 0 : index
    %c0_15 = arith.constant 0 : index
    %c0_16 = arith.constant 0 : index
    %20 = vector.load %arg7[%c0_13, %c0_14, %c0_15, %c0_16] : memref<2x1x16x128xf32, #tpu.memory_space<vmem>>, vector<2x1x16x128xf32>
    %21 = vector.shape_cast %20 : vector<2x1x16x128xf32> to vector<2x16x128xf32>
    %22 = vector.shape_cast %19 : vector<2x16x128xf32> to vector<2x1x16x128xf32>
    tpu.vector_store %arg7[%c0_13, %c0_14, %c0_15, %c0_16], %22 {strides = array<i32>} : memref<2x1x16x128xf32, #tpu.memory_space<vmem>>, vector<2x1x16x128xf32>,
    return
  }
  func.func @transform_0(%arg0: i32, %arg1: i32, %arg2: i32) -> (i32, i32, i32, i32) {
    %c1_i32 = arith.constant 1 : i32
    %0 = arith.muli %arg2, %c1_i32 : i32
    %c0_i32 = arith.constant 0 : i32
    %1 = arith.addi %0, %c0_i32 : i32
    %c0_i32_0 = arith.constant 0 : i32
    %c0_i32_1 = arith.constant 0 : i32
    %c0_i32_2 = arith.constant 0 : i32
    return %arg1, %1, %c0_i32_0, %c0_i32_1 : i32, i32, i32, i32
  }
  func.func @transform_1(%arg0: i32, %arg1: i32, %arg2: i32) -> (i32, i32, i32, i32) {
    %c1_i32 = arith.constant 1 : i32
    %0 = arith.muli %arg2, %c1_i32 : i32
    %c1_i32_0 = arith.constant 1 : i32
    %1 = arith.addi %0, %c1_i32_0 : i32
    %c0_i32 = arith.constant 0 : i32
    %c0_i32_1 = arith.constant 0 : i32
    %c0_i32_2 = arith.constant 0 : i32
    return %arg1, %1, %c0_i32, %c0_i32_1 : i32, i32, i32, i32
  }
  func.func @transform_2(%arg0: i32, %arg1: i32, %arg2: i32) -> (i32, i32, i32, i32) {
    %c1_i32 = arith.constant 1 : i32
    %0 = arith.muli %arg2, %c1_i32 : i32
    %c2_i32 = arith.constant 2 : i32
    %1 = arith.addi %0, %c2_i32 : i32
    %c0_i32 = arith.constant 0 : i32
    %c0_i32_0 = arith.constant 0 : i32
    %c0_i32_1 = arith.constant 0 : i32
    return %arg1, %1, %c0_i32, %c0_i32_0 : i32, i32, i32, i32
  }
  func.func @transform_3(%arg0: i32, %arg1: i32, %arg2: i32) -> (i32, i32) {
    %c0_i32 = arith.constant 0 : i32
    %c0_i32_0 = arith.constant 0 : i32
    return %c0_i32, %arg0 : i32, i32
  }
  func.func @transform_4(%arg0: i32, %arg1: i32, %arg2: i32) -> (i32, i32, i32, i32) {
    %c0_i32 = arith.constant 0 : i32
    %c0_i32_0 = arith.constant 0 : i32
    return %arg1, %arg2, %c0_i32, %arg0 : i32, i32, i32, i32
  }
}

</mosaic_0001>

<bundles_post_ra>
// kernel: conv_adapt_forward.1
= control target key start
LH: loop header
LB: loop body
LE: loop exit
PB: predicated region body
PF: predicated region fallthrough
CT: control target
= control target key end

     0   :  { %s1265_s15 = smov 0   ;;  %s1267_s16 = smov 0   ;;  %s1481_s0 = inlined_call_operand.vmem [shape: bf16[2,18,18,4], index: 0, kind: input, shape index: {}, may-alias: {0,1,2}]   ;;  %s1482_s1 = inlined_call_operand.vmem [shape: bf16[2,18,18,4], index: 1, kind: input, shape index: {}, may-alias: {0,1,2}]   ;;  %s1483_s2 = inlined_call_operand.vmem [shape: bf16[2,18,18,4], index: 2, kind: input, shape index: {}, may-alias: {0,1,2}]   ;;  %s1484_s3 = inlined_call_operand.vmem [shape: bf16[36,128], index: 3, kind: input, shape index: {}]   ;;  %s1485_s4 = inlined_call_operand.vmem [shape: f32[2,16,16,128], index: 4, kind: output, shape index: {}]  }
   0x1   :  { %s1269_s17 = smov 0   ;;  %s1271_s18 = smov 0  }
   0x2   :  { %s1273_s19 = smov 0   ;;  %s1275_s20 = smov 0  }
   0x3   :  { %s1277_s21 = smov 0   ;;  %s1279_s22 = smov 0  }
   0x4   :  { %s1281_s23 = smov 0  }
   0x5 LB: > { %s997_s24 = sadd.s32 4294967295, %s1230_s23   ;;  %s26_s25 = sadd.s32 1, %s1226_s22  ;;  %s1230_s23 = sphi %s1281_s23, %s14_s23   ;;  %s1226_s22 = sphi %s1279_s22, %s1497_s22   ;;  %s1222_s21 = sphi %s1277_s21, %s1496_s21   ;;  %s1218_s20 = sphi %s1275_s20, %s1495_s20   ;;  %s1214_s19 = sphi %s1273_s19, %s1494_s19   ;;  %s1210_s18 = sphi %s1271_s18, %s1493_s18   ;;  %s1206_s17 = sphi %s1269_s17, %s1492_s17   ;;  %s1202_s16 = sphi %s1267_s16, %s1491_s16   ;;  %s1198_s15 = sphi %s1265_s15, %s1490_s15  }
   0x6   : > { %p27_p0 = scmp.ge.s32.totalorder %s26_s25, 16  ;;  %s42_s26 = sadd.s32 1, %s1218_s20 }
   0x7   : > { %p49_p1 = scmp.ne.s32.totalorder %s1218_s20, %s1214_s19  ;;  %p50_p2 = scmp.eq.s32.totalorder %s1230_s23, 0 }
   0x8   : > { %s1316_s27 = scalar_select %p27_p0, 0, %s26_s25  }
   0x9   : > { %p1323_p3 = por %p50_p2, %p49_p1  ;;  %s72_s29 = sadd.s32 1, %s1210_s18 }
   0xa   : > { %s38_s30 = ssub.s32 %s1226_s22, %s1316_s27  ;;  %s66_s5 = sadd.s32 1, %s1316_s27 }
   0xb   : > { %p40_p4 = scmp.eq.s32.totalorder %s38_s30, 0  ;;  %s68_s6 = ssub.s32 %s26_s25, %s66_s5 }
   0xc   : > { %p70_p5 = scmp.eq.s32.totalorder %s68_s6, 0  ;;  %p79_p6 = scmp.ne.s32.totalorder %s1210_s18, %s1206_s17 }
   0xd   : > { %s1334_s7 = scalar_select %p40_p4, %s1218_s20, %s42_s26  }
   0xe   : > { %s1337_s8 = scalar_select %p70_p5, %s1210_s18, %s72_s29  }
   0xf   : > { %p1341_p7 = por %p79_p6, %p50_p2  ;;  %s95_s10 = sadd.s32 2, %s1226_s22 }
  0x10   : > { %s96_s11 = sadd.s32 2, %s1316_s27  ;;  %s102_s12 = sadd.s32 1, %s1202_s16 }
  0x11   : > { %s98_s13 = ssub.s32 %s95_s10, %s96_s11  ;;  %p109_p8 = scmp.ne.s32.totalorder %s1202_s16, %s1198_s15 }
  0x12   : > { %p100_p9 = scmp.eq.s32.totalorder %s98_s13, 0  ;;  %p169_p10 = scmp.eq.s32.totalorder %s997_s24, 15 }
  0x13   : > { %p1352_p11 = por %p109_p8, %p50_p2  ;;  %p1001_p13 = scmp.ge.s32.totalorder %s1230_s23, 16 }
  0x14   : > { %s1357_s25 = scalar_select %p100_p9, %s1202_s16, %s102_s12  }
  0x15   : > { %p1362_p12 = por %p169_p10, %p49_p1  ;;  %198 = sbr.rel (%p1001_p13) target bundleno = 47 (0x2f), region = 20 }
  0x1a   : > { %201 = sbr.rel (!%p1323_p3) target bundleno = 33 (0x21), region = 24  ;;  %s203_s24 = sand.u32 (%p1323_p3), 1, %s1218_s20  }
  0x1b   : > { %s1059_s29 = smul.u32 (%p1323_p3), 12, %s1226_s22 }
  0x1c   : > { %s1058_s30 = smul.u32 (%p1323_p3), 24, %s203_s24 }
  0x1d   : > { %s211_s10 = scalar_lea.vmem (%p1323_p3), %s1481_s0, %s1059_s29 }
  0x1e   : > { %v228_v0 = vld [vmem:[%s211_s10] sm:$0xff] (%p1323_p3)   ;;  %v232_v1 = vld [vmem:[%s211_s10 + $0x8] sm:$0xf] (%p1323_p3)  ;;  %v234_v2 = vld [vmem:[%s211_s10 + $0xd8] sm:$0xff] (%p1323_p3)   ;;  %s205_s11 = scalar_lea.vmem (%p1323_p3), [#allocation2], %s1058_s30 }
  0x1f   : > { %229 = vst [vmem:[%s205_s11] sm:$0xff] %v228_v0   ;;  %233 = vst [vmem:[%s205_s11 + $0x8] sm:$0xf] %v232_v1  ;;  %v238_v3 = vld [vmem:[%s211_s10 + $0xe0] sm:$0xf] }
  0x20   : > { %235 = vst [vmem:[%s205_s11 + $0xc] sm:$0xff] %v234_v2   ;;  %239 = vst [vmem:[%s205_s11 + $0x14] sm:$0xf] %v238_v3 }
  0x21 PF: > { %275 = sbr.rel (!%p1341_p7) target bundleno = 40 (0x28), region = 65  ;;  %s277_s28 = sand.u32 (%p1341_p7), 1, %s1210_s18  }
  0x22   : > { %s1003_s12 = smul.u32 (%p1341_p7), 12, %s1226_s22 }
  0x23   : > { %s1060_s13 = smul.u32 (%p1341_p7), 24, %s277_s28 }
  0x24   : > { %s890_s5 = scalar_lea.vmem (%p1341_p7), %s1482_s1, %s1003_s12 }
  0x25   : > { %v1004_v4 = vld [vmem:[%s890_s5 + $0xc] sm:$0xff] (%p1341_p7)   ;;  %v1006_v5 = vld [vmem:[%s890_s5 + $0x14] sm:$0xf] (%p1341_p7)  ;;  %v1007_v6 = vld [vmem:[%s890_s5 + $0xe4] sm:$0xff] (%p1341_p7)   ;;  %s279_s30 = scalar_lea.vmem (%p1341_p7), [#allocation3], %s1060_s13 }
  0x26   : > { %304 = vst [vmem:[%s279_s30] sm:$0xff] %v1004_v4   ;;  %308 = vst [vmem:[%s279_s30 + $0x8] sm:$0xf] %v1006_v5  ;;  %v1009_v7 = vld [vmem:[%s890_s5 + $0xec] sm:$0xf] }
  0x27   : > { %310 = vst [vmem:[%s279_s30 + $0xc] sm:$0xff] %v1007_v6   ;;  %314 = vst [vmem:[%s279_s30 + $0x14] sm:$0xf] %v1009_v7 }
  0x28 PF: > { %350 = sbr.rel (!%p1352_p11) target bundleno = 47 (0x2f), region = 106  ;;  %s352_s9 = sand.u32 (%p1352_p11), 1, %s1202_s16  }
  0x29   : > { %s1010_s6 = smul.u32 (%p1352_p11), 12, %s1226_s22 }
  0x2a   : > { %s1061_s10 = smul.u32 (%p1352_p11), 24, %s352_s9 }
  0x2b   : > { %s898_s12 = scalar_lea.vmem (%p1352_p11), %s1483_s2, %s1010_s6 }
  0x2c   : > { %v1011_v8 = vld [vmem:[%s898_s12 + $0x18] sm:$0xff] (%p1352_p11)   ;;  %v1013_v9 = vld [vmem:[%s898_s12 + $0x20] sm:$0xf] (%p1352_p11)  ;;  %v1014_v10 = vld [vmem:[%s898_s12 + $0xf0] sm:$0xff] (%p1352_p11)   ;;  %s354_s13 = scalar_lea.vmem (%p1352_p11), [#allocation4], %s1061_s10 }
  0x2d   : > { %379 = vst [vmem:[%s354_s13] sm:$0xff] %v1011_v8   ;;  %383 = vst [vmem:[%s354_s13 + $0x8] sm:$0xf] %v1013_v9  ;;  %v1016_v11 = vld [vmem:[%s898_s12 + $0xf8] sm:$0xf] }
  0x2e   : > { %385 = vst [vmem:[%s354_s13 + $0xc] sm:$0xff] %v1014_v10   ;;  %389 = vst [vmem:[%s354_s13 + $0x14] sm:$0xf] %v1016_v11 }
  0x2f PF: > { %p1017_p0 = scmp.ge.s32.totalorder %s1230_s23, 1  ;;  %p424_p1 = scmp.lt.s32.totalorder %s1230_s23, 17 }
  0x31   : > { %p425_p2 = pnand %p1017_p0, %p424_p1 }
  0x32   : > { %s438_s14 = sand.u32 (!%p425_p2), 1, %s1206_s17   ;;  %s431_s29 = sand.u32 (!%p425_p2), 1, %s1214_s19  }
  0x33   : > { %428 = sbr.rel (%p425_p2) target bundleno = 414 (0x19e), region = 147  ;;  %s1232_s9 = smov (!%p425_p2), 12  }
  0x34   : > { %s1063_s24 = smul.u32 (!%p425_p2), 24, %s438_s14  ;;  %s1233_s17 = smov (!%p425_p2), 8  }
  0x35   : > { %s1062_s5 = smul.u32 (!%p425_p2), 24, %s431_s29  ;;  %s445_s10 = sand.u32 (!%p425_p2), 1, %s1198_s15  }
  0x36   : > { %s1394_s30 = scalar_lea.vmem (!%p425_p2), [#allocation3], %s1063_s24  ;;  %s1064_s11 = smul.u32 (!%p425_p2), 24, %s445_s10 }
  0x37   : > { %s433_s6 = scalar_lea.vmem (!%p425_p2), [#allocation2], %s1062_s5  ;;  %s1234_s28 = smov (!%p425_p2), 4  }
  0x38   : > { %vm560_vm0 = vcmask 1046528   ;;  %v1397_v12 = vld [vmem:[%s1394_s30 + $0xc] sm:$0xff]   ;;  %vm531_vm1 = vsmask.f32 7424  ;;  %v1400_v13 = vld [vmem:[%s1394_s30] sm:$0xff]   ;;  %s447_s15 = scalar_lea.vmem [#allocation4], %s1064_s11 }
  0x39   : > { %583 = vrot.lane.b32.xlu1 %v1397_v12, %s1232_s9  ;;  %581 = vrot.lane.b32.xlu0 %v1400_v13, %s1232_s9  ;;  %v1404_v14 = vld [vmem:[%s433_s6] sm:$0xff]   ;;  %v1148_v15 = vld [vmem:[%s433_s6 + $0x8] ss:$0 sps:$4 sm:$0x11]   ;;  %v604_v17 = vshrl.u32 %v1397_v12, 16  ;;  %v606_v30 = vshll.u32 %v1397_v12, 16 }
  0x3a   : > { %v1406_v16 = vld [vmem:[%s433_s6 + $0xc] sm:$0xff]   ;;  %v561_v18 = vrot.slane %v1404_v14, 1  ;;  %v562_v19 = vrot.slane %v1148_v15, 1  ;;  %v533_v20 = vshrl.u32 %v1404_v14, 16  ;;  %v535_v21 = vshll.u32 %v1404_v14, 16  ;;  %v1154_v58 = vld [vmem:[%s447_s15] sm:$0xff]  }
  0x3b   : > { %v540_v22 = vshll.u32 %v1148_v15, 16  ;;  %v1150_v23 = vld [vmem:[%s433_s6 + $0x14] ss:$0 sps:$4 sm:$0x11]   ;;  %v564_v24 = vrot.slane %v1406_v16, 1  ;;  %v545_v25 = vshrl.u32 %v1406_v16, 16 }
  0x3c   : > { %v563_v26 = vsel %vm560_vm0, %v561_v18, %v562_v19  ;;  %v537_v27 = vrot.slane %v535_v21, 1  ;;  %v547_v28 = vshll.u32 %v1406_v16, 16  ;;  %v1151_v29 = vld [vmem:[%s1394_s30 + $0x14] ss:$0 sps:$4 sm:$0x11]   ;;  %v565_v32 = vrot.slane %v1150_v23, 1 }
  0x3d   : > { %567 = vrot.lane.b32.xlu1 %v563_v26, %s1233_s17  ;;  %v542_v31 = vrot.slane %v540_v22, 1  ;;  %v552_v33 = vshll.u32 %v1150_v23, 16  ;;  %v608_v36 = vrot.slane %v606_v30, 1  ;;  %v611_v37 = vshll.u32 %v1151_v29, 16  ;;  %v1153_v56 = vld [vmem:[%s447_s15 + $0xc] sm:$0xff]   ;;  %s1235_s12 = smov 16  }
  0x3e   : > { %v538_v34 = vor.u32 %v537_v27, %v533_v20  ;;  %v549_v35 = vrot.slane %v547_v28, 1  ;;  %v1152_v38 = vld [vmem:[%s1394_s30 + $0x8] ss:$0 sps:$4 sm:$0x11]   ;;  %v566_v39 = vsel %vm560_vm0, %v564_v24, %v565_v32  ;;  %v592_v41 = vshrl.u32 %v1400_v13, 16  ;;  %s1236_s24 = smov 20  }
  0x3f   : > { %v554_v40 = vrot.slane %v552_v33, 1  ;;  %v594_v42 = vshll.u32 %v1400_v13, 16  ;;  %v609_v45 = vor.u32 %v608_v36, %v604_v17  ;;  %v613_v46 = vrot.slane %v611_v37, 1  ;;  %v1155_v59 = vld [vmem:[%s447_s15 + $0x14] ss:$0 sps:$4 sm:$0x11]  }
  0x40   : > { %v543_v43 = vsel %vm531_vm1, %v538_v34, %v542_v31  ;;  %v550_v44 = vor.u32 %v549_v35, %v545_v25  ;;  %v599_v48 = vshll.u32 %v1152_v38, 16  ;;  %v622_v49 = vrot.slane %v1397_v12, 1  ;;  %v1156_v0 = vld [vmem:[%s447_s15 + $0x8] ss:$0 sps:$4 sm:$0x11]   ;;  %s1237_s9 = smov 24  }
  0x41   : > { %556 = vrot.lane.b32.xlu0 %v543_v43, %s1234_s28  ;;  %569 = vrot.lane.b32.xlu1 %v566_v39, %s1233_s17  ;;  %v596_v47 = vrot.slane %v594_v42, 1  ;;  %v614_v51 = vsel %vm531_vm1, %v609_v45, %v613_v46  ;;  %v623_v52 = vrot.slane %v1151_v29, 1  ;;  %v619_v53 = vrot.slane %v1400_v13, 1  ;;  %v1157_v4 = vld [vmem:[%s1484_s3 + $0x10] ss:$0 sps:$4 sm:$0x33]  }
  0x42   : > { %v555_v50 = vsel %vm531_vm1, %v550_v44, %v554_v40  ;;  %v601_v55 = vrot.slane %v599_v48, 1  ;;  %v620_v57 = vrot.slane %v1152_v38, 1  ;;  %v662_v60 = vshrl.u32 %v1153_v56, 16  ;;  %v1158_v11 = vld [vmem:[%s1484_s3 + $0x8] sm:$0xff]   ;;  %v1159_v20 = vld [vmem:[%s1484_s3] sm:$0xff]   ;;  %s1238_s10 = smov 28  }
  0x43   : > { %v597_v54 = vor.u32 %v596_v47, %v592_v41  ;;  %v624_v62 = vsel %vm560_vm0, %v622_v49, %v623_v52  ;;  %v664_v63 = vshll.u32 %v1153_v56, 16  ;;  %v669_v1 = vshll.u32 %v1155_v59, 16  ;;  %s1239_s11 = smov 32  }
  0x44   : > { %v652_v2 = vshll.u32 %v1154_v58, 16  ;;  %v621_v5 = vsel %vm560_vm0, %v619_v53, %v620_v57  ;;  %v650_v6 = vshrl.u32 %v1154_v58, 16  ;;  %v657_v10 = vshll.u32 %v1156_v0, 16 }
  0x45   : > { %558 = vrot.lane.b32.xlu0 %v555_v50, %s1234_s28  ;;  %617 = vrot.lane.b32.xlu1 %v614_v51, %s1235_s12  ;;  %v602_v61 = vsel %vm531_vm1, %v597_v54, %v601_v55  ;;  %v666_v3 = vrot.slane %v664_v63, 1  ;;  %v671_v8 = vrot.slane %v669_v1, 1  ;;  %vm747_vm2 = vcmask 1041408   ;;  %s1018_s28 = sshll.u32 %s431_s29, 5 }
  0x46   : > { %v654_v9 = vrot.slane %v652_v2, 1  ;;  %1057 = vmatprep.subr.msk.bf16.mxu0 %vm747_vm2, %v1157_v4  ;;  %v749_v12 = vsel %vm747_vm2, %v1157_v4, 0  ;;  %v680_v13 = vrot.slane %v1153_v56, 1  ;;  %v659_v18 = vrot.slane %v657_v10, 1  ;;  %s480_s15 = scalar_lea.vmem [#allocation5], %s1018_s28 }
  0x47   : > { %v667_v7 = vor.u32 %v666_v3, %v662_v60  ;;  %v681_v19 = vrot.slane %v1155_v59, 1  ;;  %1048 = vmatpush3.bf16.msra.mxu0 %v749_v12  ;;  %v677_v23 = vrot.slane %v1154_v58, 1  ;;  %v678_v24 = vrot.slane %v1156_v0, 1 }
  0x48   : > { %v655_v17 = vor.u32 %v654_v9, %v650_v6  ;;  %1049 = vmatprep.subr.bf16.mxu0 %v1158_v11  ;;  %vm687_vm3 = vcmask 31744   ;;  %vm692_vm4 = vcmask 64512   ;;  %vm697_vm5 = vcmask 97280  }
  0x49   : > { %615 = vrot.lane.b32.xlu0 %v602_v61, %s1235_s12  ;;  %627 = vrot.lane.b32.xlu1 %v624_v62, %s1236_s24  ;;  %v672_v15 = vsel %vm531_vm1, %v667_v7, %v671_v8  ;;  %v682_v22 = vsel %vm560_vm0, %v680_v13, %v681_v19  ;;  %v679_v25 = vsel %vm560_vm0, %v677_v23, %v678_v24  ;;  %vm702_vm6 = vcmask 130048   ;;  %s1041_s12 = sshll.u32 (%p1362_p12), %s1222_s21, 4 }
  0x4a   : > { %v660_v21 = vsel %vm531_vm1, %v655_v17, %v659_v18  ;;  %vm707_vm7 = vcmask 162816   ;;  %vm712_vm8 = vcmask 195584   ;;  %vm717_vm9 = vcmask 228352   ;;  %s817_s29 = scalar_lea.vmem (%p1362_p12), %s1485_s4, %s1041_s12 }
  0x4b   : > { %1050 = vmatpush3.bf16.msra.mxu0 %v1158_v11  ;;  %vm722_vm10 = vcmask 261120   ;;  %vm742_vm11 = vcmask 293888  }
  0x4c   : > { %1051 = vmatprep.subr.bf16.mxu0 %v1159_v20 }
  0x4d   : > { %625 = vrot.lane.b32.xlu0 %v621_v5, %s1236_s24  ;;  %641 = vrot.lane.b32.xlu1 %v1153_v56, %s1237_s9 }
  0x4f   : > { %1052 = vmatpush3.bf16.msra.mxu0 %v1159_v20 }
  0x51   : > { %639 = vrot.lane.b32.xlu0 %v1154_v58, %s1237_s9  ;;  %675 = vrot.lane.b32.xlu1 %v672_v15, %s1238_s10 }
  0x55   : > { %673 = vrot.lane.b32.xlu0 %v660_v21, %s1238_s10  ;;  %685 = vrot.lane.b32.xlu1 %v682_v22, %s1239_s11 }
  0x59   : > { %683 = vrot.lane.b32.xlu0 %v679_v25, %s1239_s11 }
  0xab   : > { %v584_v26 = vpop.permute.xlu1 %583  ;;  %v582_v27 = vpop.permute.xlu0 %581 }
  0xaf   : > { %v568_v28 = vpop.permute.xlu1 %567 }
  0xb3   : > { %v557_v29 = vpop.permute.xlu0 %556  ;;  %v570_v30 = vpop.permute.xlu1 %569 }
  0xb4   : > { %v689_v38 = vsel %vm687_vm3, %v1404_v14, %v557_v29 }
  0xb5   : > { %v694_v41 = vsel %vm692_vm4, %v689_v38, %v568_v28 }
  0xb6   : > { %v699_v45 = vsel %vm697_vm5, %v694_v41, %v582_v27 }
  0xb7   : > { %v559_v31 = vpop.permute.xlu0 %558  ;;  %v618_v32 = vpop.permute.xlu1 %617 }
  0xb8   : > { %v691_v35 = vsel %vm687_vm3, %v1406_v16, %v559_v31 }
  0xb9   : > { %v696_v39 = vsel %vm692_vm4, %v691_v35, %v570_v30 }
  0xba   : > { %v701_v42 = vsel %vm697_vm5, %v696_v39, %v584_v26 }
  0xbb   : > { %v616_v33 = vpop.permute.xlu0 %615  ;;  %v628_v34 = vpop.permute.xlu1 %627  ;;  %v706_v44 = vsel %vm702_vm6, %v701_v42, %v618_v32 }
  0xbc   : > { %v704_v47 = vsel %vm702_vm6, %v699_v45, %v616_v33  ;;  %v711_v48 = vsel %vm707_vm7, %v706_v44, %v628_v34 }
  0xbf   : > { %v626_v36 = vpop.permute.xlu0 %625  ;;  %v642_v37 = vpop.permute.xlu1 %641 }
  0xc0   : > { %v709_v16 = vsel %vm707_vm7, %v704_v47, %v626_v36  ;;  %v716_v50 = vsel %vm712_vm8, %v711_v48, %v642_v37 }
  0xc3   : > { %v640_v40 = vpop.permute.xlu0 %639  ;;  %v676_v43 = vpop.permute.xlu1 %675 }
  0xc4   : > { %v714_v49 = vsel %vm712_vm8, %v709_v16, %v640_v40  ;;  %v721_v53 = vsel %vm717_vm9, %v716_v50, %v676_v43 }
  0xc7   : > { %v674_v46 = vpop.permute.xlu0 %673  ;;  %v686_v14 = vpop.permute.xlu1 %685 }
  0xc8   : > { %v719_v51 = vsel %vm717_vm9, %v714_v49, %v674_v46  ;;  %v726_v55 = vsel %vm722_vm10, %v721_v53, %v686_v14 }
  0xcb   : > { %v684_v52 = vpop.permute.xlu0 %683 }
  0xcc   : > { %v724_v54 = vsel %vm722_vm10, %v719_v51, %v684_v52 }
  0xcd   : > { %1053 = vmatprep.mubr.msk.bf16.mxu0 %vm742_vm11, %v724_v54 }
  0xce   : > { %1054 = vmatmul.mubr.msk.bf16.vlgmr.msra.gmra.mxu0 %vm742_vm11, %v726_v55 }
 0x18e   : > { %v1055_v56 = vpop.f32.mrf.mxu0 }
 0x18f   : > { %802 = vst [vmem:[%s480_s15 + $0x10] sm:$0xff] %v1055_v56 }
 0x190   : > { %v785_v57 = vpop.f32.mrf.mxu0 }
 0x191   : > { %800 = vst [vmem:[%s480_s15] sm:$0xff] %v785_v57  ;;  %810 = sbr.rel (!%p1362_p12) target bundleno = 414 (0x19e), region = 163 }
 0x192   : > { %v1056_v58 = vpop.f32.mrf.mxu0 }
 0x193   : > { %803 = vst [vmem:[%s480_s15 + $0x18] sm:$0xff] %v1056_v58 }
 0x194   : > { %v788_v59 = vpop.f32.mrf.mxu0 }
 0x195   : > { %801 = vst [vmem:[%s480_s15 + $0x8] sm:$0xff] %v788_v59 }
 0x196   : > { %v856_v62 = vld [vmem:[%s480_s15 + $0x10] sm:$0xff] }
 0x197   : > { %857 = vst [vmem:[%s817_s29 + $0x100] sm:$0xff] %v856_v62 }
 0x198   : > { %v852_v60 = vld [vmem:[%s480_s15] sm:$0xff] }
 0x199   : > { %853 = vst [vmem:[%s817_s29] sm:$0xff] %v852_v60 }
 0x19a   : > { %v858_v63 = vld [vmem:[%s480_s15 + $0x18] sm:$0xff] }
 0x19b   : > { %859 = vst [vmem:[%s817_s29 + $0x108] sm:$0xff] %v858_v63 }
 0x19c   : > { %v854_v61 = vld [vmem:[%s480_s15 + $0x8] sm:$0xff] }
 0x19d   : > { %855 = vst [vmem:[%s817_s29 + $0x8] sm:$0xff] %v854_v61 }
 0x19e PF: > { %s14_s23 = sadd.s32 1, %s1230_s23   ;;  %s1490_s15 = smov %s1202_s16 }
 0x19f   : > { %p11_p3 = scmp.ge.s32.totalorder %s14_s23, 18   ;;  %s1491_s16 = smov %s1357_s25 }
 0x1a0   : > { %s1492_s17 = smov %s1210_s18  ;;  %s1493_s18 = smov %s1337_s8 }
 0x1a1   : > { %s1494_s19 = smov %s1218_s20  ;;  %s1495_s20 = smov %s1334_s7 }
 0x1a2   : > { %s1496_s21 = smov %s1226_s22  ;;  %s1497_s22 = smov %s1316_s27 }
 0x1a3   :  { %13 = sbr.rel (!%p11_p3) target bundleno = 5 (0x5), region = 251 }

</bundles_post_ra>
